<compile_context>
chip_gen: v7x
topology: tpu7x:2x2x1
jax: 0.10.0
libtpu: 0.0.40
codegen_flags: <defaults>
</compile_context>

<pallas_src>
import jax
import jax.numpy as jnp
from jax.experimental import pallas as pl
from jax.experimental.pallas import tpu as pltpu

_LANE = 128          # vreg lane width: pad feature/class dims to multiples of this
_NEG_INF = -1e30     # bias for padded class columns -> exp(...) == 0 in the softmax


def _round_up(x, m):
    return ((x + m - 1) // m) * m


def _mlp_logsoftmax_kernel(x_ref, w1_ref, b1_ref, w2_ref, b2_ref, o_ref):
    # One node-tile per grid step: two bf16 MXU matmuls (f32 accumulate),
    # ReLU, and a numerically stable log-softmax over the (padded) class axis.
    x = x_ref[...]                                                       # bf16 [Tn, Dp]
    h = jnp.dot(x, w1_ref[...], preferred_element_type=jnp.float32)      # f32  [Tn, Hp]
    h = jnp.maximum(h + b1_ref[...], 0.0)                                # ReLU (f32)
    logits = jnp.dot(h.astype(jnp.bfloat16), w2_ref[...],
                     preferred_element_type=jnp.float32) + b2_ref[...]   # f32  [Tn, Cp]
    # Padded class columns carry a -1e30 bias (set in the wrapper): they never
    # win the max and contribute 0 to the sum, so real-class results are exact.
    m = jnp.max(logits, axis=-1, keepdims=True)
    shifted = logits - m
    lse = jnp.log(jnp.sum(jnp.exp(shifted), axis=-1, keepdims=True))
    o_ref[...] = (shifted - lse).astype(o_ref.dtype)


def simple_node_classifier(x, w1, b1, w2, b2, *, tile_n=256):
    """fc1 -> ReLU -> fc2 -> log_softmax(dim=1).

    x: [N, D] f32; w1: [D, H]; b1: [1, H]; w2: [H, C]; b2: [1, C]
    (Linear weights stored pre-transposed as [in_features, out_features].)
    """
    n, d = x.shape
    h = w1.shape[1]
    c = w2.shape[1]

    d_p = _round_up(d, _LANE)
    h_p = _round_up(h, _LANE)
    c_p = _round_up(c, _LANE)
    n_p = _round_up(n, tile_n)

    # Lane-dense padding. Zero-padding D/H is an exact no-op on the math
    # (padded hidden units see zero weights and zero bias -> ReLU(0)=0 and
    # contribute nothing to fc2). Padded class columns get bias -1e30 so the
    # log-softmax denominator only sees the real classes.
    x_p = jnp.pad(x, ((0, n_p - n), (0, d_p - d))).astype(jnp.bfloat16)
    w1_p = jnp.pad(w1, ((0, d_p - d), (0, h_p - h))).astype(jnp.bfloat16)
    b1_p = jnp.pad(b1, ((0, 0), (0, h_p - h))).astype(jnp.float32)
    w2_p = jnp.pad(w2, ((0, h_p - h), (0, c_p - c))).astype(jnp.bfloat16)
    b2_p = jnp.pad(b2.astype(jnp.float32), ((0, 0), (0, c_p - c)),
                   constant_values=_NEG_INF)

    grid = (n_p // tile_n,)
    out_p = pl.pallas_call(
        _mlp_logsoftmax_kernel,
        out_shape=jax.ShapeDtypeStruct((n_p, c_p), jnp.float32),
        grid=grid,
        in_specs=[
            pl.BlockSpec((tile_n, d_p), lambda i: (i, 0)),   # stream node tiles
            pl.BlockSpec((d_p, h_p), lambda i: (0, 0)),      # weights stay resident
            pl.BlockSpec((1, h_p), lambda i: (0, 0)),
            pl.BlockSpec((h_p, c_p), lambda i: (0, 0)),
            pl.BlockSpec((1, c_p), lambda i: (0, 0)),
        ],
        out_specs=pl.BlockSpec((tile_n, c_p), lambda i: (i, 0)),
        compiler_params=pltpu.CompilerParams(
            # Node tiles are independent -> megacore-shardable on v7x.
            dimension_semantics=("parallel",),
            # Explicit scoped-VMEM limit; per-step footprint here is < 1 MiB,
            # and 32 MiB is within every generation's default region.
            vmem_limit_bytes=32 * 1024 * 1024,
        ),
    )(x_p, w1_p, b1_p, w2_p, b2_p)

    # Drop node-row and class-column padding.
    return out_p[:n, :c]


def reference(x, w1, b1, w2, b2):
    h = jnp.maximum(x @ w1 + b1, 0.0)
    logits = h @ w2 + b2
    return jax.nn.log_softmax(logits, axis=1)


if __name__ == "__main__":
    # Shapes implied by the module: nodes x input_dim -> hidden -> num_classes.
    # N is large enough to exercise the node grid (2 tiles of 256 rows).
    N, INPUT_DIM, HIDDEN_DIM, NUM_CLASSES = 512, 16, 32, 8

    key = jax.random.PRNGKey(0)
    kx, k1, kb1, k2, kb2 = jax.random.split(key, 5)

    x = jax.random.normal(kx, (N, INPUT_DIM), dtype=jnp.float32)
    # Deterministic parameter init (Linear weights stored transposed: [in, out]).
    w1 = jax.random.normal(k1, (INPUT_DIM, HIDDEN_DIM), dtype=jnp.float32) * 0.1
    b1 = jax.random.normal(kb1, (1, HIDDEN_DIM), dtype=jnp.float32) * 0.1
    w2 = jax.random.normal(k2, (HIDDEN_DIM, NUM_CLASSES), dtype=jnp.float32) * 0.1
    b2 = jax.random.normal(kb2, (1, NUM_CLASSES), dtype=jnp.float32) * 0.1

    out = simple_node_classifier(x, w1, b1, w2, b2, tile_n=256)
    out = jax.block_until_ready(out)

    ref = reference(x, w1, b1, w2, b2)
    assert out.shape == (N, NUM_CLASSES)
    # bf16 matmul operands (f32 accumulation) vs full-f32 reference -> compare
    # at bf16-level tolerance.
    assert jnp.allclose(out, ref, atol=3e-2, rtol=3e-2), "mismatch vs JAX reference"

    print("KERNEL_OK")
</pallas_src>

<mosaic_0001>
module attributes {stable_mosaic.version = 11 : i64} {
  func.func @_mlp_logsoftmax_kernel(%arg0: i32, %arg1: memref<256x128xbf16, #tpu.memory_space<vmem>>, %arg2: memref<128x128xbf16, #tpu.memory_space<vmem>>, %arg3: memref<1x128xf32, #tpu.memory_space<vmem>>, %arg4: memref<128x128xbf16, #tpu.memory_space<vmem>>, %arg5: memref<1x128xf32, #tpu.memory_space<vmem>>, %arg6: memref<256x128xf32, #tpu.memory_space<vmem>>) attributes {dimension_semantics = [#tpu.dimension_semantics<parallel>], iteration_bounds = array<i64: 2>, scalar_prefetch = 0 : i64, scratch_operands = 0 : i64, tpu.core_type = #tpu.core_type<tc>, window_params = [{transform_indices = @transform_0, window_bounds = array<i64: 256, 128>}, {pipeline_mode = #tpu.pipeline_mode<synchronous>, transform_indices = @transform_1, window_bounds = array<i64: 128, 128>}, {pipeline_mode = #tpu.pipeline_mode<synchronous>, transform_indices = @transform_2, window_bounds = array<i64: 1, 128>}, {pipeline_mode = #tpu.pipeline_mode<synchronous>, transform_indices = @transform_3, window_bounds = array<i64: 128, 128>}, {pipeline_mode = #tpu.pipeline_mode<synchronous>, transform_indices = @transform_4, window_bounds = array<i64: 1, 128>}, {transform_indices = @transform_5, window_bounds = array<i64: 256, 128>}]} {
    %c0 = arith.constant 0 : index
    %c0_0 = arith.constant 0 : index
    %0 = vector.load %arg1[%c0, %c0_0] : memref<256x128xbf16, #tpu.memory_space<vmem>>, vector<256x128xbf16>
    %c0_1 = arith.constant 0 : index
    %c0_2 = arith.constant 0 : index
    %1 = vector.load %arg2[%c0_1, %c0_2] : memref<128x128xbf16, #tpu.memory_space<vmem>>, vector<128x128xbf16>
    %cst = arith.constant dense<0.000000e+00> : vector<256x128xf32>
    %2 = tpu.matmul %0, %1, %cst {dimension_numbers = #tpu.dot_dimension_numbers<[1], [0], [0], [1], [0, 0, 1, 1], [], []>} : vector<256x128xbf16>, vector<128x128xbf16>, vector<256x128xf32> -> vector<256x128xf32>
    %c0_3 = arith.constant 0 : index
    %c0_4 = arith.constant 0 : index
    %3 = vector.load %arg3[%c0_3, %c0_4] : memref<1x128xf32, #tpu.memory_space<vmem>>, vector<1x128xf32>
    %4 = vector.broadcast %3 : vector<1x128xf32> to vector<256x128xf32>
    %5 = arith.addf %2, %4 : vector<256x128xf32>
    %cst_5 = arith.constant 0.000000e+00 : f32
    %6 = vector.broadcast %cst_5 : f32 to vector<256x128xf32>
    %7 = arith.maximumf %5, %6 : vector<256x128xf32>
    %8 = arith.truncf %7 : vector<256x128xf32> to vector<256x128xbf16>
    %c0_6 = arith.constant 0 : index
    %c0_7 = arith.constant 0 : index
    %9 = vector.load %arg4[%c0_6, %c0_7] : memref<128x128xbf16, #tpu.memory_space<vmem>>, vector<128x128xbf16>
    %cst_8 = arith.constant dense<0.000000e+00> : vector<256x128xf32>
    %10 = tpu.matmul %8, %9, %cst_8 {dimension_numbers = #tpu.dot_dimension_numbers<[1], [0], [0], [1], [0, 0, 1, 1], [], []>} : vector<256x128xbf16>, vector<128x128xbf16>, vector<256x128xf32> -> vector<256x128xf32>
    %c0_9 = arith.constant 0 : index
    %c0_10 = arith.constant 0 : index
    %11 = vector.load %arg5[%c0_9, %c0_10] : memref<1x128xf32, #tpu.memory_space<vmem>>, vector<1x128xf32>
    %12 = vector.broadcast %11 : vector<1x128xf32> to vector<256x128xf32>
    %13 = arith.addf %10, %12 : vector<256x128xf32>
    %cst_11 = arith.constant dense<0xFF800000> : vector<256xf32>
    %14 = vector.multi_reduction <maximumf>, %13, %cst_11 [1] : vector<256x128xf32> to vector<256xf32>
    %15 = vector.shape_cast %14 : vector<256xf32> to vector<256x1xf32>
    %16 = vector.broadcast %15 : vector<256x1xf32> to vector<256x128xf32>
    %17 = arith.subf %13, %16 : vector<256x128xf32>
    %18 = math.exp %17 : vector<256x128xf32>
    %cst_12 = arith.constant dense<0.000000e+00> : vector<256xf32>
    %19 = vector.multi_reduction <add>, %18, %cst_12 [1] : vector<256x128xf32> to vector<256xf32>
    %20 = vector.shape_cast %19 : vector<256xf32> to vector<256x1xf32>
    %21 = math.log %20 : vector<256x1xf32>
    %22 = vector.broadcast %21 : vector<256x1xf32> to vector<256x128xf32>
    %23 = arith.subf %17, %22 : vector<256x128xf32>
    %c0_13 = arith.constant 0 : index
    %c0_14 = arith.constant 0 : index
    %24 = vector.load %arg6[%c0_13, %c0_14] : memref<256x128xf32, #tpu.memory_space<vmem>>, vector<256x128xf32>
    tpu.vector_store %arg6[%c0_13, %c0_14], %23 {strides = array<i32>} : memref<256x128xf32, #tpu.memory_space<vmem>>, vector<256x128xf32>,
    return
  }
  func.func @transform_0(%arg0: i32) -> (i32, i32) {
    %c0_i32 = arith.constant 0 : i32
    %c0_i32_0 = arith.constant 0 : i32
    return %arg0, %c0_i32 : i32, i32
  }
  func.func @transform_1(%arg0: i32) -> (i32, i32) {
    %c0_i32 = arith.constant 0 : i32
    %c0_i32_0 = arith.constant 0 : i32
    %c0_i32_1 = arith.constant 0 : i32
    return %c0_i32, %c0_i32_0 : i32, i32
  }
  func.func @transform_2(%arg0: i32) -> (i32, i32) {
    %c0_i32 = arith.constant 0 : i32
    %c0_i32_0 = arith.constant 0 : i32
    %c0_i32_1 = arith.constant 0 : i32
    return %c0_i32, %c0_i32_0 : i32, i32
  }
  func.func @transform_3(%arg0: i32) -> (i32, i32) {
    %c0_i32 = arith.constant 0 : i32
    %c0_i32_0 = arith.constant 0 : i32
    %c0_i32_1 = arith.constant 0 : i32
    return %c0_i32, %c0_i32_0 : i32, i32
  }
  func.func @transform_4(%arg0: i32) -> (i32, i32) {
    %c0_i32 = arith.constant 0 : i32
    %c0_i32_0 = arith.constant 0 : i32
    %c0_i32_1 = arith.constant 0 : i32
    return %c0_i32, %c0_i32_0 : i32, i32
  }
  func.func @transform_5(%arg0: i32) -> (i32, i32) {
    %c0_i32 = arith.constant 0 : i32
    %c0_i32_0 = arith.constant 0 : i32
    return %arg0, %c0_i32 : i32, i32
  }
}

</mosaic_0001>

<bundles_post_ra>
// kernel: tpu_custom_call.1
= control target key start
LH: loop header
LB: loop body
LE: loop exit
PB: predicated region body
PF: predicated region fallthrough
CT: control target
= control target key end

     0   :  { %10 = vsyncpa [#allocation3], 0  ;;  %s2625_s0 = inlined_call_operand.hbm [shape: bf16[512,128], index: 0, kind: input, shape index: {}]   ;;  %s2626_s1 = inlined_call_operand.hbm [shape: bf16[128,128], index: 1, kind: input, shape index: {}]   ;;  %s2627_s2 = inlined_call_operand.vmem [shape: f32[1,128], index: 2, kind: input, shape index: {}]   ;;  %s2628_s3 = inlined_call_operand.hbm [shape: bf16[128,128], index: 3, kind: input, shape index: {}]   ;;  %s2629_s4 = inlined_call_operand.vmem [shape: f32[1,128], index: 4, kind: input, shape index: {}]   ;;  %s2630_s5 = inlined_call_operand.hbm [shape: f32[512,128], index: 5, kind: output, shape index: {}]  }
   0x1   :  { %12 = vsyncpa [#allocation3 + $0x1], 0 }
   0x2   :  { %13 = vsyncpa [#allocation6], 0 }
   0x3   :  { %14 = vsyncpa [#allocation4], 0 }
   0x4   :  { %16 = vsyncpa [#allocation4 + $0x1], 0  ;;  %s1998_s18 = smov 0   ;;  %s2000_s19 = smov 0  }
   0x5   :  { %s2002_s20 = smov 0   ;;  %s2004_s21 = smov 0  }
   0x6 LB: > { %s2019_s22 = sadd.s32 4294967295, %s1958_s21   ;;  %s1373_s23 = sadd.s32 4294967294, %s1958_s21   ;;  %s1958_s21 = sphi %s2004_s21, %s2650_s21   ;;  %s1954_s20 = sphi %s2002_s20, %s2649_s20   ;;  %s1950_s19 = sphi %s2000_s19, %s2648_s19   ;;  %s1946_s18 = sphi %s1998_s18, %s2647_s18  }
   0x7   : > { %p42_p0 = scmp.ne.s32.totalorder %s1950_s19, %s1946_s18  ;;  %p2631_p1 = scmp.eq.s32.totalorder %s2019_s22, 0 }
   0x8   : > { %p156_p3 = scmp.eq.s32.totalorder %s1373_s23, 1  ;;  %p1374_p5 = scmp.ge.s32.totalorder %s1958_s21, 1 }
   0x9   : > { %p2028_p4 = por %p2631_p1, %p42_p0  ;;  %p163_p7 = scmp.lt.s32.totalorder %s1958_s21, 3 }
   0xa   : > { %p2033_p6 = por %p156_p3, %p42_p0  ;;  %s1960_s27 = smov [#allocation5]  }
   0xb   : > { %s2634_s24 = scalar_select %p2028_p4, 1, 0 }
   0xc   : > { %s2635_s25 = scalar_select %p2033_p6, 1, 0 }
   0xd   : > { %p2038_p8 = pnand %p1374_p5, %p163_p7  ;;  %s175_s28 = sshll.u32 %s1960_s27, 4  ;;  %s2042_s28 = int_to_ptr.vmem [resolvable:$true] %s175_s28 }
   0xe   : > { %s1961_s30 = smov [#allocation7]   ;;  %s1802_s9 = scalar_lea.hbm %s2626_s1, 1024 }
   0xf   : > { %p1583_p9 = pneg %p2038_p8  ;;  %s191_s6 = sshll.u32 %s1961_s30, 4  ;;  %s2053_s6 = int_to_ptr.vmem [resolvable:$true] %s191_s6 }
  0x10   : > { %p1803_p12 = scmp.ne.s32.totalorder %s2626_s1, %s1802_s9  ;;  %p1809_p5 = scmp.lt.u32.totalorder %s1802_s9, %s2626_s1 }
  0x11   : > { %p2049_p11 = pnand %p1583_p9, %p2631_p1 }
  0x13   : > { %p1804_p13 = pneg %p2049_p11 }
  0x15   : > { %p1805_p0 = pnand %p1804_p13, %p1803_p12 }
  0x17   : > { %p1806_p3 = pneg %p1805_p0 }
  0x19   : > { %p1811_p7 = pnand %p1809_p5, %p1806_p3 }
  0x1b   : > { %1814 = shalt.err (!%p1811_p7)
}
  0x1c   : > { %s1815_s14 = scalar_lea.vmem %s2042_s28, 1024  ;;  %p1823_p2 = scmp.lt.s32.totalorder %s2042_s28, %s2042_s28 }
  0x1d   : > { %p1816_p9 = scmp.ne.s32.totalorder %s2042_s28, %s1815_s14  ;;  %p1824_p12 = scmp.lt.s32.totalorder %s1815_s14, %s1815_s14 }
  0x1f   : > { %p1818_p10 = pnand %p1816_p9, %p1804_p13  ;;  %p1825_p0 = por %p1824_p12, %p1823_p2 }
  0x21   : > { %p1819_p1 = pneg %p1818_p10 }
  0x23   : > { %p1826_p6 = pnand %p1825_p0, %p1819_p1 }
  0x25   : > { %1829 = shalt.err (!%p1826_p6)
}
  0x26   : > { %s1962_s15 = smov 64   ;;  %s1963_s16 = smov 4  }
  0x27   : > { %1586 = dma.hbm_to_vmem [thread:$0]  (!%p2049_p11), %s2626_s1, 1024, %s2042_s28, [#allocation6], %s1962_s15, %s1962_s15, %s1963_s16  }
  0x28   : > { %s1830_s7 = scalar_lea.hbm %s2628_s3, 1024 }
  0x29   : > { %p1831_p1 = scmp.ne.s32.totalorder %s2628_s3, %s1830_s7  ;;  %p1837_p10 = scmp.lt.u32.totalorder %s1830_s7, %s2628_s3 }
  0x2b   : > { %p1833_p2 = pnand %p1831_p1, %p1804_p13 }
  0x2d   : > { %p1834_p6 = pneg %p1833_p2 }
  0x2f   : > { %p1839_p3 = pnand %p1837_p10, %p1834_p6 }
  0x31   : > { %1842 = shalt.err (!%p1839_p3)
}
  0x32   : > { %s1843_s28 = scalar_lea.vmem %s2053_s6, 1024  ;;  %p1851_p12 = scmp.lt.s32.totalorder %s2053_s6, %s2053_s6 }
  0x33   : > { %p1844_p5 = scmp.ne.s32.totalorder %s2053_s6, %s1843_s28  ;;  %p1852_p0 = scmp.lt.s32.totalorder %s1843_s28, %s1843_s28 }
  0x35   : > { %p1846_p7 = pnand %p1844_p5, %p1804_p13  ;;  %p1853_p1 = por %p1852_p0, %p1851_p12 }
  0x37   : > { %p1847_p9 = pneg %p1846_p7 }
  0x39   : > { %p1854_p2 = pnand %p1853_p1, %p1847_p9 }
  0x3b   : > { %1857 = shalt.err (!%p1854_p2)
}
  0x3c   : > { %1589 = dma.hbm_to_vmem [thread:$0]  (!%p2049_p11), %s2628_s3, 1024, %s2053_s6, [#allocation6], %s1962_s15, %s1962_s15, %s1963_s16  }
  0x3d   : > { %s2114_s29 = sadd.s32 1, %s1958_s21   ;;  %s29_s14 = sadd.s32 1, %s1954_s20 }
  0x3e   : > { %s26_s17 = ssub.s32 %s1958_s21, %s2114_s29  ;;  %p36_p13 = scmp.ne.s32.totalorder %s1954_s20, %s1950_s19 }
  0x3f   : > { %p27_p6 = scmp.eq.s32.totalorder %s26_s17, 0  ;;  %p37_p10 = scmp.eq.s32.totalorder %s1958_s21, 0 }
  0x40   : > { %p2638_p3 = scmp.eq.s32.totalorder %s2019_s22, 1  ;;  %p1600_p7 = scmp.lt.s32.totalorder %s1958_s21, 2 }
  0x41   : > { %s2130_s27 = scalar_select %p27_p6, %s1954_s20, %s29_s14  }
  0x42   : > { %p2124_p5 = por %p2638_p3, %p36_p13  ;;  %p38_p9 = por %p37_p10, %p36_p13 }
  0x43   : > { %s208_s30 = sand.u32 1, %s1954_s20   ;;  %s1425_s6 = sshll.u32 %s1958_s21, 11 }
  0x44   : > { %s2639_s23 = scalar_select %p2124_p5, 1, 0 }
  0x45   : > { %s1378_s7 = sshll.u32 %s208_s30, 7  ;;  %s2137_s10 = scalar_lea.hbm %s2625_s0, %s1425_s6 }
  0x46   : > { %s212_s11 = scalar_lea.vmem [#allocation2], %s1378_s7  ;;  %p2141_p11 = pnand %p1600_p7, %p38_p9 }
  0x47   : > { %s219_s28 = sshll.u32 %s212_s11, 4  ;;  %s2145_s13 = scalar_lea.sflag [#allocation3], %s208_s30  ;;  %s2139_s28 = int_to_ptr.vmem [resolvable:$true] %s219_s28 }
  0x48   : > { %s1858_s14 = scalar_lea.hbm %s2137_s10, 2048  ;;  %p1860_p0 = pneg %p2141_p11 }
  0x49   : > { %p1859_p12 = scmp.ne.s32.totalorder %s2137_s10, %s1858_s14  ;;  %s1863_s6 = scalar_lea.hbm %s2625_s0, 4096 }
  0x4a   : > { %p1864_p13 = scmp.lt.u32.totalorder %s2137_s10, %s2625_s0  ;;  %p1865_p6 = scmp.lt.u32.totalorder %s1863_s6, %s1858_s14 }
  0x4b   : > { %p1861_p1 = pnand %p1860_p0, %p1859_p12  ;;  %p1867_p3 = scmp.lt.u32.totalorder %s1858_s14, %s2137_s10 }
  0x4c   : > { %p1866_p10 = por %p1865_p6, %p1864_p13 }
  0x4d   : > { %p1862_p2 = pneg %p1861_p1 }
  0x4e   : > { %p1868_p7 = por %p1867_p3, %p1866_p10 }
  0x50   : > { %p1869_p9 = pnand %p1868_p7, %p1862_p2 }
  0x52   : > { %1872 = shalt.err (!%p1869_p9)
}
  0x53   : > { %s1873_s30 = scalar_lea.vmem %s2139_s28, 2048  ;;  %s1964_s11 = smov [#allocation2]  }
  0x54   : > { %p1874_p12 = scmp.ne.s32.totalorder %s2139_s28, %s1873_s30  ;;  %s1878_s17 = sshll.u32 %s1964_s11, 4  ;;  %s1879_s17 = int_to_ptr.vmem [resolvable:$false] %s1878_s17 }
  0x55   : > { %s1880_s7 = scalar_lea.vmem %s1879_s17, 4096  ;;  %p1881_p4 = scmp.lt.s32.totalorder %s2139_s28, %s1879_s17 }
  0x56   : > { %p1876_p1 = pnand %p1874_p12, %p1860_p0  ;;  %p1882_p13 = scmp.lt.s32.totalorder %s1880_s7, %s1873_s30 }
  0x58   : > { %p1877_p5 = pneg %p1876_p1  ;;  %p1883_p6 = por %p1882_p13, %p1881_p4 }
  0x5a   : > { %p1884_p10 = pnand %p1883_p6, %p1877_p5 }
  0x5c   : > { %1887 = shalt.err (!%p1884_p10)
}
  0x5d   : > { %1593 = dma.hbm_to_vmem [thread:$0]  (!%p2141_p11), %s2137_s10, 2048, %s2139_s28, %s2145_s13, %s1962_s15, %s1962_s15, %s1963_s16  }
  0x5e   : > { %231 = sbr.rel (%p2038_p8) target bundleno = 967 (0x3c7), region = 40  ;;  %s2179_s14 = sand.u32 (!%p2038_p8), 1, %s1950_s19  }
  0x5f   : > { %s1382_s6 = sshll.u32 (!%p2038_p8), %s2179_s14, 7  ;;  %s234_s8 = scalar_lea.sflag (!%p2038_p8), [#allocation3], %s2179_s14 }
  0x60   : > { %s2183_s9 = scalar_lea.vmem (!%p2038_p8), [#allocation2], %s1382_s6  ;;  %p2641_p4 = scmp.ne.s32.totalorder (!%p2038_p8), %s2634_s24, 0 }
  0x65   : > { %1933 = dma.done.wait (%p2641_p4), %s234_s8, 2048  }
  0x66   : > { %1935 = vsyncadd (%p2641_p4), %s234_s8, 4294965248  ;;  %p2642_p5 = scmp.eq.s32.totalorder %s2019_s22, 0 }
  0x68   : > { %1937 = dma.done.wait (%p2642_p5), [#allocation6], 2048   ;;  %p2643_p8 = pmov %p2642_p5 }
  0x69   : > { %v1642_v0 = vld [vmem:[#allocation5] sm:$0xff]   ;;  %v1643_v1 = vld [vmem:[#allocation5 + $0x8] sm:$0xff]   ;;  %v1644_v2 = vld [vmem:[#allocation5 + $0x10] sm:$0xff]   ;;  %s1385_s10 = sshll.u32 %s2179_s14, 8  ;;  %s1426_s12 = sshll.u32 %s2019_s22, 12 }
  0x6a   : > { %1939 = vsyncadd (%p2643_p8), [#allocation6], 4294965248  ;;  %1475 = vmatprep.subr.bf16.mxu0 %v1642_v0  ;;  %v1645_v3 = vld [vmem:[#allocation5 + $0x18] sm:$0xff]   ;;  %v1650_v4 = vld [vmem:[%s2183_s9] sm:$0xff]   ;;  %s2509_s28 = scalar_lea.vmem [#allocation8], %s1385_s10  ;;  %s2577_s17 = scalar_lea.hbm %s2630_s5, %s1426_s12 }
  0x6b   : > { %1476 = vmatpush3.bf16.msra.mxu0 %v1642_v0  ;;  %1491 = vmatprep.mubr.bf16.mxu0 %v1650_v4  ;;  %v1646_v5 = vld [vmem:[#allocation5 + $0x20] sm:$0xff]   ;;  %v1647_v6 = vld [vmem:[#allocation5 + $0x28] sm:$0xff]   ;;  %v1648_v7 = vld [vmem:[#allocation5 + $0x30] sm:$0xff]   ;;  %s1281_s13 = sshll.u32 %s2509_s28, 4  ;;  %s1268_s22 = scalar_lea.sflag [#allocation4], %s2179_s14  ;;  %s2579_s13 = int_to_ptr.vmem [resolvable:$true] %s1281_s13 }
  0x6c   : > { %1477 = vmatprep.subr.bf16.mxu0 %v1643_v1  ;;  %v1649_v8 = vld [vmem:[#allocation5 + $0x38] sm:$0xff]   ;;  %v1666_v9 = vld [vmem:[#allocation7] sm:$0xff]   ;;  %v1667_v10 = vld [vmem:[#allocation7 + $0x8] sm:$0xff]   ;;  %s1888_s7 = scalar_lea.vmem %s2579_s13, 4096  ;;  %p2644_p0 = scmp.ne.s32.totalorder %s2639_s23, 0 }
  0x6d   : > { %1523 = vmatprep.subr.bf16.mxu1 %v1666_v9  ;;  %v1668_v11 = vld [vmem:[#allocation7 + $0x10] sm:$0xff]   ;;  %v1651_v12 = vld [vmem:[%s2183_s9 + $0x8] sm:$0xff]   ;;  %v1669_v14 = vld [vmem:[#allocation7 + $0x18] sm:$0xff]   ;;  %p1889_p11 = scmp.ne.s32.totalorder %s2579_s13, %s1888_s7  ;;  %s1965_s6 = smov [#allocation8]  }
  0x6e   : > { %1524 = vmatpush3.bf16.msra.mxu1 %v1666_v9  ;;  %v1652_v13 = vld [vmem:[%s2183_s9 + $0x10] sm:$0xff]   ;;  %v1670_v15 = vld [vmem:[#allocation7 + $0x20] sm:$0xff]   ;;  %v1653_v16 = vld [vmem:[%s2183_s9 + $0x18] sm:$0xff]   ;;  %s1892_s8 = sshll.u32 %s1965_s6, 4  ;;  %s1893_s8 = int_to_ptr.vmem [resolvable:$false] %s1892_s8 }
  0x6f   : > { %1478 = vmatpush3.bf16.msra.mxu0 %v1643_v1  ;;  %1525 = vmatprep.subr.bf16.mxu1 %v1667_v10  ;;  %v1654_v17 = vld [vmem:[%s2183_s9 + $0x20] sm:$0xff]   ;;  %v1671_v18 = vld [vmem:[#allocation7 + $0x28] sm:$0xff]   ;;  %v1656_v20 = vld [vmem:[%s2183_s9 + $0x30] sm:$0xff]   ;;  %p1890_p2 = pnand %p1889_p11, %p2644_p0  ;;  %p1895_p7 = scmp.lt.s32.totalorder %s2579_s13, %s1893_s8 }
  0x70   : > { %1479 = vmatprep.subr.bf16.mxu0 %v1644_v2  ;;  %v1655_v19 = vld [vmem:[%s2183_s9 + $0x28] sm:$0xff]   ;;  %v1657_v21 = vld [vmem:[%s2183_s9 + $0x38] sm:$0xff]   ;;  %v1658_v22 = vld [vmem:[%s2183_s9 + $0x40] sm:$0xff]  }
  0x71   : > { %v1659_v23 = vld [vmem:[%s2183_s9 + $0x48] sm:$0xff]   ;;  %v1660_v24 = vld [vmem:[%s2183_s9 + $0x50] sm:$0xff]   ;;  %v1661_v25 = vld [vmem:[%s2183_s9 + $0x58] sm:$0xff]   ;;  %p1891_p3 = pneg %p1890_p2 }
  0x72   : > { %1526 = vmatpush3.bf16.msra.mxu1 %v1667_v10  ;;  %v1662_v26 = vld [vmem:[%s2183_s9 + $0x60] sm:$0xff]   ;;  %v1663_v27 = vld [vmem:[%s2183_s9 + $0x68] sm:$0xff]   ;;  %v1664_v28 = vld [vmem:[%s2183_s9 + $0x70] sm:$0xff]  }
  0x73   : > { %1480 = vmatpush3.bf16.msra.mxu0 %v1644_v2  ;;  %1527 = vmatprep.subr.bf16.mxu1 %v1668_v11  ;;  %v1665_v29 = vld [vmem:[%s2183_s9 + $0x78] sm:$0xff]   ;;  %v1672_v30 = vld [vmem:[#allocation7 + $0x30] sm:$0xff]   ;;  %v2212_v32 = vld [vmem:[%s2627_s2] ss:$0 sm:$0xff]  ;;  %s1894_s9 = scalar_lea.vmem %s1893_s8, 8192 }
  0x74   : > { %1481 = vmatprep.subr.bf16.mxu0 %v1645_v3  ;;  %v1673_v31 = vld [vmem:[#allocation7 + $0x38] sm:$0xff]   ;;  %p1896_p9 = scmp.lt.s32.totalorder %s1894_s9, %s1888_s7 }
  0x76   : > { %1528 = vmatpush3.bf16.msra.mxu1 %v1668_v11  ;;  %p1897_p12 = por %p1896_p9, %p1895_p7 }
  0x77   : > { %1482 = vmatpush3.bf16.msra.mxu0 %v1645_v3  ;;  %1529 = vmatprep.subr.bf16.mxu1 %v1669_v14 }
  0x78   : > { %1483 = vmatprep.subr.bf16.mxu0 %v1646_v5  ;;  %p1898_p1 = pnand %p1897_p12, %p1891_p3 }
  0x7a   : > { %1530 = vmatpush3.bf16.msra.mxu1 %v1669_v14 }
  0x7b   : > { %1484 = vmatpush3.bf16.msra.mxu0 %v1646_v5  ;;  %1531 = vmatprep.subr.bf16.mxu1 %v1670_v15 }
  0x7c   : > { %1485 = vmatprep.subr.bf16.mxu0 %v1647_v6 }
  0x7e   : > { %1532 = vmatpush3.bf16.msra.mxu1 %v1670_v15 }
  0x7f   : > { %1486 = vmatpush3.bf16.msra.mxu0 %v1647_v6  ;;  %1533 = vmatprep.subr.bf16.mxu1 %v1671_v18 }
  0x80   : > { %1487 = vmatprep.subr.bf16.mxu0 %v1648_v7 }
  0x82   : > { %1534 = vmatpush3.bf16.msra.mxu1 %v1671_v18 }
  0x83   : > { %1488 = vmatpush3.bf16.msra.mxu0 %v1648_v7  ;;  %1535 = vmatprep.subr.bf16.mxu1 %v1672_v30 }
  0x84   : > { %1489 = vmatprep.subr.bf16.mxu0 %v1649_v8 }
  0x86   : > { %1536 = vmatpush3.bf16.msra.mxu1 %v1672_v30 }
  0x87   : > { %1490 = vmatpush3.bf16.msra.mxu0 %v1649_v8  ;;  %1537 = vmatprep.subr.bf16.mxu1 %v1673_v31 }
  0x8a   : > { %1492 = vmatmul.mubr.bf16.vlgmr.msra.gmra.mrb[0].mxu0 %v1651_v12  ;;  %1538 = vmatpush3.bf16.msra.mxu1 %v1673_v31 }
  0x8b   : > { %1495 = vmatprep.mubr.bf16.mxu0 %v1652_v13 }
  0x92   : > { %1496 = vmatmul.mubr.bf16.gmra.mrb[4].mxu0 %v1653_v16 }
  0x93   : > { %1499 = vmatprep.mubr.bf16.mxu0 %v1654_v17 }
  0x9a   : > { %1500 = vmatmul.mubr.bf16.gmra.mrb[8].mxu0 %v1655_v19 }
  0x9b   : > { %1503 = vmatprep.mubr.bf16.mxu0 %v1656_v20 }
  0xa2   : > { %1504 = vmatmul.mubr.bf16.gmra.mrb[12].mxu0 %v1657_v21 }
  0xa3   : > { %1507 = vmatprep.mubr.bf16.mxu0 %v1658_v22 }
  0xaa   : > { %1508 = vmatmul.mubr.bf16.gmra.mrb[16].mxu0 %v1659_v23 }
  0xab   : > { %1511 = vmatprep.mubr.bf16.mxu0 %v1660_v24 }
  0xb2   : > { %1512 = vmatmul.mubr.bf16.gmra.mrb[20].mxu0 %v1661_v25 }
  0xb3   : > { %1515 = vmatprep.mubr.bf16.mxu0 %v1662_v26 }
  0xba   : > { %1516 = vmatmul.mubr.bf16.gmra.mrb[24].mxu0 %v1663_v27 }
  0xbb   : > { %1519 = vmatprep.mubr.bf16.mxu0 %v1664_v28 }
  0xc2   : > { %1520 = vmatmul.mubr.bf16.gmra.mrb[28].mxu0 %v1665_v29 }
 0x15d   : > { %v1493_v33 = vpop.f32.mrb[0].mxu0 }
 0x15e   : > { %v517_v34 = vadd.f32 %v1493_v33, %v2212_v32  ;;  %v508_v35 = vpop.f32.mrb[1].mxu0 }
 0x15f   : > { %v509_v36 = vadd.f32 %v2212_v32, %v508_v35  ;;  %v1494_v37 = vpop.f32.mrb[2].mxu0 }
 0x160   : > { %v520_v38 = vadd.f32 %v1494_v37, %v2212_v32  ;;  %v511_v39 = vpop.f32.mrb[3].mxu0  ;;  %v637_v41 = vmax.f32 %v517_v34, 0.0 }
 0x161   : > { %v512_v40 = vadd.f32 %v2212_v32, %v511_v39  ;;  %v635_v43 = vmax.f32 %v509_v36, 0.0 }
 0x162   : > { %v638_v42 = vmax.f32 %v520_v38, 0.0 }
 0x163   : > { %v636_v44 = vmax.f32 %v512_v40, 0.0 }
 0x164   : > { %v668_v45 = vpack.c.bf16 %v638_v42, %v637_v41 }
 0x165   : > { %v1497_v46 = vpop.f32.mrb[4].mxu0  ;;  %v667_v47 = vpack.c.bf16 %v636_v44, %v635_v43 }
 0x166   : > { %v533_v48 = vadd.f32 %v1497_v46, %v2212_v32  ;;  %v524_v49 = vpop.f32.mrb[5].mxu0 }
 0x167   : > { %v525_v50 = vadd.f32 %v2212_v32, %v524_v49  ;;  %v1498_v51 = vpop.f32.mrb[6].mxu0  ;;  %1539 = vmatprep.mubr.bf16.mxu1 %v667_v47 }
 0x168   : > { %v641_v52 = vmax.f32 %v533_v48, 0.0  ;;  %v536_v53 = vadd.f32 %v1498_v51, %v2212_v32  ;;  %v527_v54 = vpop.f32.mrb[7].mxu0  ;;  %1540 = vmatmul.mubr.bf16.vlgmr.msra.gmra.mrb[0].mxu1 %v668_v45 }
 0x169   : > { %v528_v55 = vadd.f32 %v2212_v32, %v527_v54  ;;  %v639_v57 = vmax.f32 %v525_v50, 0.0 }
 0x16a   : > { %v642_v56 = vmax.f32 %v536_v53, 0.0 }
 0x16b   : > { %v640_v58 = vmax.f32 %v528_v55, 0.0 }
 0x16c   : > { %v670_v59 = vpack.c.bf16 %v642_v56, %v641_v52 }
 0x16d   : > { %v669_v60 = vpack.c.bf16 %v640_v58, %v639_v57  ;;  %v1501_v61 = vpop.f32.mrb[8].mxu0 }
 0x16e   : > { %v549_v62 = vadd.f32 %v1501_v61, %v2212_v32  ;;  %v540_v63 = vpop.f32.mrb[9].mxu0 }
 0x16f   : > { %v541_v0 = vadd.f32 %v2212_v32, %v540_v63  ;;  %v1502_v1 = vpop.f32.mrb[10].mxu0  ;;  %1543 = vmatprep.mubr.bf16.mxu1 %v669_v60 }
 0x170   : > { %v645_v2 = vmax.f32 %v549_v62, 0.0  ;;  %v552_v3 = vadd.f32 %v1502_v1, %v2212_v32  ;;  %v543_v4 = vpop.f32.mrb[11].mxu0  ;;  %1544 = vmatmul.mubr.bf16.gmra.mrb[4].mxu1 %v670_v59 }
 0x171   : > { %v544_v5 = vadd.f32 %v2212_v32, %v543_v4  ;;  %v643_v7 = vmax.f32 %v541_v0, 0.0 }
 0x172   : > { %v646_v6 = vmax.f32 %v552_v3, 0.0 }
 0x173   : > { %v644_v8 = vmax.f32 %v544_v5, 0.0 }
 0x174   : > { %v672_v9 = vpack.c.bf16 %v646_v6, %v645_v2 }
 0x175   : > { %v671_v10 = vpack.c.bf16 %v644_v8, %v643_v7  ;;  %v1505_v11 = vpop.f32.mrb[12].mxu0 }
 0x176   : > { %v565_v12 = vadd.f32 %v1505_v11, %v2212_v32  ;;  %v556_v13 = vpop.f32.mrb[13].mxu0 }
 0x177   : > { %v557_v14 = vadd.f32 %v2212_v32, %v556_v13  ;;  %v1506_v15 = vpop.f32.mrb[14].mxu0  ;;  %1547 = vmatprep.mubr.bf16.mxu1 %v671_v10 }
 0x178   : > { %v649_v16 = vmax.f32 %v565_v12, 0.0  ;;  %v568_v17 = vadd.f32 %v1506_v15, %v2212_v32  ;;  %v559_v18 = vpop.f32.mrb[15].mxu0  ;;  %1548 = vmatmul.mubr.bf16.gmra.mrb[8].mxu1 %v672_v9 }
 0x179   : > { %v560_v19 = vadd.f32 %v2212_v32, %v559_v18  ;;  %v647_v21 = vmax.f32 %v557_v14, 0.0  ;;  %v2249_v18 = vld [vmem:[%s2629_s4] ss:$0 sm:$0xff] }
 0x17a   : > { %v650_v20 = vmax.f32 %v568_v17, 0.0 }
 0x17b   : > { %v648_v22 = vmax.f32 %v560_v19, 0.0 }
 0x17c   : > { %v674_v23 = vpack.c.bf16 %v650_v20, %v649_v16 }
 0x17d   : > { %v673_v24 = vpack.c.bf16 %v648_v22, %v647_v21  ;;  %v1509_v25 = vpop.f32.mrb[16].mxu0 }
 0x17e   : > { %v581_v26 = vadd.f32 %v1509_v25, %v2212_v32  ;;  %v572_v27 = vpop.f32.mrb[17].mxu0 }
 0x17f   : > { %v573_v28 = vadd.f32 %v2212_v32, %v572_v27  ;;  %v1510_v29 = vpop.f32.mrb[18].mxu0  ;;  %1551 = vmatprep.mubr.bf16.mxu1 %v673_v24 }
 0x180   : > { %v653_v30 = vmax.f32 %v581_v26, 0.0  ;;  %v584_v31 = vadd.f32 %v1510_v29, %v2212_v32  ;;  %v575_v33 = vpop.f32.mrb[19].mxu0  ;;  %1552 = vmatmul.mubr.bf16.gmra.mrb[12].mxu1 %v674_v23 }
 0x181   : > { %v576_v34 = vadd.f32 %v2212_v32, %v575_v33  ;;  %v651_v36 = vmax.f32 %v573_v28, 0.0 }
 0x182   : > { %v654_v35 = vmax.f32 %v584_v31, 0.0 }
 0x183   : > { %v652_v37 = vmax.f32 %v576_v34, 0.0 }
 0x184   : > { %v676_v38 = vpack.c.bf16 %v654_v35, %v653_v30 }
 0x185   : > { %v675_v39 = vpack.c.bf16 %v652_v37, %v651_v36  ;;  %v1513_v40 = vpop.f32.mrb[20].mxu0 }
 0x186   : > { %v597_v41 = vadd.f32 %v1513_v40, %v2212_v32  ;;  %v588_v42 = vpop.f32.mrb[21].mxu0 }
 0x187   : > { %v589_v43 = vadd.f32 %v2212_v32, %v588_v42  ;;  %v1514_v44 = vpop.f32.mrb[22].mxu0  ;;  %1555 = vmatprep.mubr.bf16.mxu1 %v675_v39 }
 0x188   : > { %v657_v45 = vmax.f32 %v597_v41, 0.0  ;;  %v600_v46 = vadd.f32 %v1514_v44, %v2212_v32  ;;  %v591_v47 = vpop.f32.mrb[23].mxu0  ;;  %1556 = vmatmul.mubr.bf16.gmra.mrb[16].mxu1 %v676_v38 }
 0x189   : > { %v592_v48 = vadd.f32 %v2212_v32, %v591_v47  ;;  %v655_v50 = vmax.f32 %v589_v43, 0.0 }
 0x18a   : > { %v658_v49 = vmax.f32 %v600_v46, 0.0 }
 0x18b   : > { %v656_v51 = vmax.f32 %v592_v48, 0.0 }
 0x18c   : > { %v678_v52 = vpack.c.bf16 %v658_v49, %v657_v45 }
 0x18d   : > { %v677_v53 = vpack.c.bf16 %v656_v51, %v655_v50  ;;  %v1517_v54 = vpop.f32.mrb[24].mxu0 }
 0x18e   : > { %v613_v55 = vadd.f32 %v1517_v54, %v2212_v32  ;;  %v604_v56 = vpop.f32.mrb[25].mxu0 }
 0x18f   : > { %v605_v57 = vadd.f32 %v2212_v32, %v604_v56  ;;  %v1518_v58 = vpop.f32.mrb[26].mxu0  ;;  %1559 = vmatprep.mubr.bf16.mxu1 %v677_v53 }
 0x190   : > { %v661_v59 = vmax.f32 %v613_v55, 0.0  ;;  %v616_v60 = vadd.f32 %v1518_v58, %v2212_v32  ;;  %v607_v61 = vpop.f32.mrb[27].mxu0  ;;  %1560 = vmatmul.mubr.bf16.gmra.mrb[20].mxu1 %v678_v52 }
 0x191   : > { %v608_v62 = vadd.f32 %v2212_v32, %v607_v61  ;;  %v659_v0 = vmax.f32 %v605_v57, 0.0 }
 0x192   : > { %v662_v63 = vmax.f32 %v616_v60, 0.0 }
 0x193   : > { %v660_v1 = vmax.f32 %v608_v62, 0.0 }
 0x194   : > { %v680_v2 = vpack.c.bf16 %v662_v63, %v661_v59 }
 0x195   : > { %v679_v3 = vpack.c.bf16 %v660_v1, %v659_v0  ;;  %v1521_v4 = vpop.f32.mrb[28].mxu0 }
 0x196   : > { %v629_v5 = vadd.f32 %v1521_v4, %v2212_v32  ;;  %v620_v6 = vpop.f32.mrb[29].mxu0 }
 0x197   : > { %v621_v7 = vadd.f32 %v2212_v32, %v620_v6  ;;  %v1522_v8 = vpop.f32.mrb[30].mxu0  ;;  %1563 = vmatprep.mubr.bf16.mxu1 %v679_v3 }
 0x198   : > { %v665_v9 = vmax.f32 %v629_v5, 0.0  ;;  %v632_v10 = vadd.f32 %v1522_v8, %v2212_v32  ;;  %v623_v11 = vpop.f32.mrb[31].mxu0  ;;  %1564 = vmatmul.mubr.bf16.gmra.mrb[24].mxu1 %v680_v2 }
 0x199   : > { %v624_v12 = vadd.f32 %v2212_v32, %v623_v11  ;;  %v663_v14 = vmax.f32 %v621_v7, 0.0 }
 0x19a   : > { %v666_v13 = vmax.f32 %v632_v10, 0.0 }
 0x19b   : > { %v664_v15 = vmax.f32 %v624_v12, 0.0 }
 0x19c   : > { %v682_v16 = vpack.c.bf16 %v666_v13, %v665_v9 }
 0x19d   : > { %v681_v17 = vpack.c.bf16 %v664_v15, %v663_v14 }
 0x19f   : > { %1567 = vmatprep.mubr.bf16.mxu1 %v681_v17 }
 0x1a0   : > { %1568 = vmatmul.mubr.bf16.gmra.mrb[28].mxu1 %v682_v16 }
 0x23b   : > { %v1541_v19 = vpop.f32.mrb[0].mxu1 }
 0x23c   : > { %v2252_v20 = vadd.f32 %v1541_v19, %v2249_v18  ;;  %v788_v21 = vpop.f32.mrb[1].mxu1 }
 0x23d   : > { %v2255_v22 = vadd.f32 %v2249_v18, %v788_v21  ;;  %v1542_v32 = vpop.f32.mrb[2].mxu1 }
 0x23e   : > { %919 = vmax.xlane.f32.xlu1 %v2252_v20  ;;  %v791_v23 = vpop.f32.mrb[3].mxu1  ;;  %v2260_v24 = vadd.f32 %v1542_v32, %v2249_v18 }
 0x23f   : > { %915 = vmax.xlane.f32.xlu0 %v2255_v22  ;;  %v2263_v25 = vadd.f32 %v2249_v18, %v791_v23 }
 0x242   : > { %921 = vmax.xlane.f32.xlu1 %v2260_v24 }
 0x243   : > { %v1545_v26 = vpop.f32.mrb[4].mxu1  ;;  %917 = vmax.xlane.f32.xlu0 %v2263_v25 }
 0x244   : > { %v2268_v27 = vadd.f32 %v1545_v26, %v2249_v18  ;;  %v804_v28 = vpop.f32.mrb[5].mxu1 }
 0x245   : > { %v1546_v29 = vpop.f32.mrb[6].mxu1  ;;  %v2276_v33 = vadd.f32 %v2249_v18, %v804_v28 }
 0x246   : > { %v2271_v30 = vadd.f32 %v1546_v29, %v2249_v18  ;;  %v807_v31 = vpop.f32.mrb[7].mxu1 }
 0x247   : > { %927 = vmax.xlane.f32.xlu0 %v2268_v27  ;;  %v2279_v34 = vadd.f32 %v2249_v18, %v807_v31 }
 0x248   : > { %929 = vmax.xlane.f32.xlu1 %v2271_v30 }
 0x24b   : > { %v1549_v35 = vpop.f32.mrb[8].mxu1  ;;  %923 = vmax.xlane.f32.xlu0 %v2276_v33 }
 0x24c   : > { %v2283_v36 = vadd.f32 %v1549_v35, %v2249_v18  ;;  %v820_v37 = vpop.f32.mrb[9].mxu1  ;;  %925 = vmax.xlane.f32.xlu1 %v2279_v34 }
 0x24d   : > { %v1550_v38 = vpop.f32.mrb[10].mxu1  ;;  %v2292_v41 = vadd.f32 %v2249_v18, %v820_v37 }
 0x24e   : > { %v2287_v39 = vadd.f32 %v1550_v38, %v2249_v18  ;;  %v823_v40 = vpop.f32.mrb[11].mxu1 }
 0x24f   : > { %935 = vmax.xlane.f32.xlu0 %v2283_v36  ;;  %v2295_v42 = vadd.f32 %v2249_v18, %v823_v40 }
 0x250   : > { %937 = vmax.xlane.f32.xlu1 %v2287_v39 }
 0x253   : > { %v1553_v43 = vpop.f32.mrb[12].mxu1  ;;  %931 = vmax.xlane.f32.xlu0 %v2292_v41 }
 0x254   : > { %v2299_v44 = vadd.f32 %v1553_v43, %v2249_v18  ;;  %v836_v45 = vpop.f32.mrb[13].mxu1  ;;  %933 = vmax.xlane.f32.xlu1 %v2295_v42 }
 0x255   : > { %v1554_v46 = vpop.f32.mrb[14].mxu1  ;;  %v2308_v49 = vadd.f32 %v2249_v18, %v836_v45 }
 0x256   : > { %v2303_v47 = vadd.f32 %v1554_v46, %v2249_v18  ;;  %v839_v48 = vpop.f32.mrb[15].mxu1 }
 0x257   : > { %943 = vmax.xlane.f32.xlu0 %v2299_v44  ;;  %v2311_v50 = vadd.f32 %v2249_v18, %v839_v48 }
 0x258   : > { %945 = vmax.xlane.f32.xlu1 %v2303_v47 }
 0x25b   : > { %v1557_v51 = vpop.f32.mrb[16].mxu1  ;;  %939 = vmax.xlane.f32.xlu0 %v2308_v49 }
 0x25c   : > { %v2315_v52 = vadd.f32 %v1557_v51, %v2249_v18  ;;  %v852_v53 = vpop.f32.mrb[17].mxu1  ;;  %941 = vmax.xlane.f32.xlu1 %v2311_v50 }
 0x25d   : > { %v1558_v54 = vpop.f32.mrb[18].mxu1  ;;  %v2324_v57 = vadd.f32 %v2249_v18, %v852_v53 }
 0x25e   : > { %v2319_v55 = vadd.f32 %v1558_v54, %v2249_v18  ;;  %v855_v56 = vpop.f32.mrb[19].mxu1 }
 0x25f   : > { %951 = vmax.xlane.f32.xlu0 %v2315_v52  ;;  %v2327_v58 = vadd.f32 %v2249_v18, %v855_v56 }
 0x260   : > { %953 = vmax.xlane.f32.xlu1 %v2319_v55 }
 0x263   : > { %v1561_v59 = vpop.f32.mrb[20].mxu1  ;;  %947 = vmax.xlane.f32.xlu0 %v2324_v57 }
 0x264   : > { %v2331_v60 = vadd.f32 %v1561_v59, %v2249_v18  ;;  %v868_v61 = vpop.f32.mrb[21].mxu1  ;;  %949 = vmax.xlane.f32.xlu1 %v2327_v58 }
 0x265   : > { %v1562_v62 = vpop.f32.mrb[22].mxu1  ;;  %v2340_v1 = vadd.f32 %v2249_v18, %v868_v61 }
 0x266   : > { %v2335_v63 = vadd.f32 %v1562_v62, %v2249_v18  ;;  %v871_v0 = vpop.f32.mrb[23].mxu1 }
 0x267   : > { %959 = vmax.xlane.f32.xlu0 %v2331_v60  ;;  %v2343_v2 = vadd.f32 %v2249_v18, %v871_v0 }
 0x268   : > { %961 = vmax.xlane.f32.xlu1 %v2335_v63 }
 0x26b   : > { %v1565_v3 = vpop.f32.mrb[24].mxu1  ;;  %955 = vmax.xlane.f32.xlu0 %v2340_v1 }
 0x26c   : > { %v2347_v4 = vadd.f32 %v1565_v3, %v2249_v18  ;;  %v884_v5 = vpop.f32.mrb[25].mxu1  ;;  %957 = vmax.xlane.f32.xlu1 %v2343_v2 }
 0x26d   : > { %v1566_v6 = vpop.f32.mrb[26].mxu1  ;;  %v2356_v9 = vadd.f32 %v2249_v18, %v884_v5 }
 0x26e   : > { %v2351_v7 = vadd.f32 %v1566_v6, %v2249_v18  ;;  %v887_v8 = vpop.f32.mrb[27].mxu1 }
 0x26f   : > { %967 = vmax.xlane.f32.xlu0 %v2347_v4  ;;  %v2359_v10 = vadd.f32 %v2249_v18, %v887_v8 }
 0x270   : > { %969 = vmax.xlane.f32.xlu1 %v2351_v7 }
 0x273   : > { %v1569_v11 = vpop.f32.mrb[28].mxu1  ;;  %963 = vmax.xlane.f32.xlu0 %v2356_v9 }
 0x274   : > { %v900_v12 = vpop.f32.mrb[29].mxu1  ;;  %965 = vmax.xlane.f32.xlu1 %v2359_v10  ;;  %v2371_v17 = vadd.f32 %v1569_v11, %v2249_v18 }
 0x275   : > { %v2364_v13 = vadd.f32 %v2249_v18, %v900_v12  ;;  %v1570_v14 = vpop.f32.mrb[30].mxu1 }
 0x276   : > { %v903_v15 = vpop.f32.mrb[31].mxu1  ;;  %v2375_v19 = vadd.f32 %v1570_v14, %v2249_v18 }
 0x277   : > { %v2367_v16 = vadd.f32 %v2249_v18, %v903_v15  ;;  %971 = vmax.xlane.f32.xlu0 %v2364_v13 }
 0x279   : > { %973 = vmax.xlane.f32.xlu1 %v2367_v16 }
 0x27b   : > { %975 = vmax.xlane.f32.xlu0 %v2371_v17 }
 0x27d   : > { %977 = vmax.xlane.f32.xlu1 %v2375_v19 }
 0x2cb   : > { %v920_v21 = vpop.xlane.xlu1 %919 }
 0x2cc   : > { %v2380_v32 = vsub.f32 %v2252_v20, %v920_v21  ;;  %v916_v23 = vpop.xlane.xlu0 %915 }
 0x2cd   : > { %v2383_v26 = vsub.f32 %v2255_v22, %v916_v23 }
 0x2ce   : > { %v1015_v28 = vmul.f32 1.442695, %v2380_v32 }
 0x2cf   : > { %v1011_v29 = vmul.f32 1.442695, %v2383_v26  ;;  %v922_v31 = vpop.xlane.xlu1 %921 }
 0x2d0   : > { %1674 = vpow2.f32 %v1015_v28  ;;  %v2388_v18 = vsub.f32 %v2260_v24, %v922_v31  ;;  %v918_v35 = vpop.xlane.xlu0 %917 }
 0x2d1   : > { %v2391_v37 = vsub.f32 %v2263_v25, %v918_v35  ;;  %1676 = vpow2.f32 %v1011_v29 }
 0x2d2   : > { %v1017_v20 = vmul.f32 1.442695, %v2388_v18 }
 0x2d3   : > { %v1013_v22 = vmul.f32 1.442695, %v2391_v37 }
 0x2d4   : > { %1678 = vpow2.f32 %v1017_v20  ;;  %v928_v38 = vpop.xlane.xlu0 %927 }
 0x2d5   : > { %v2396_v40 = vsub.f32 %v2268_v27, %v928_v38  ;;  %v930_v43 = vpop.xlane.xlu1 %929  ;;  %1680 = vpow2.f32 %v1013_v22 }
 0x2d6   : > { %v2399_v45 = vsub.f32 %v2271_v30, %v930_v43 }
 0x2d7   : > { %v1023_v24 = vmul.f32 1.442695, %v2396_v40 }
 0x2d8   : > { %v1025_v25 = vmul.f32 1.442695, %v2399_v45  ;;  %v924_v46 = vpop.xlane.xlu0 %923 }
 0x2d9   : > { %1682 = vpow2.f32 %v1023_v24  ;;  %v2404_v48 = vsub.f32 %v2276_v33, %v924_v46  ;;  %v926_v51 = vpop.xlane.xlu1 %925 }
 0x2da   : > { %v1675_v53 = vpop.eup %1674  ;;  %v2407_v54 = vsub.f32 %v2279_v34, %v926_v51  ;;  %1684 = vpow2.f32 %v1025_v25 }
 0x2db   : > { %v1019_v27 = vmul.f32 1.442695, %v2404_v48  ;;  %1079 = vadd.xlane.f32.xlu0 %v1675_v53  ;;  %v1677_v59 = vpop.eup %1676 }
 0x2dc   : > { %v1021_v30 = vmul.f32 1.442695, %v2407_v54  ;;  %v936_v56 = vpop.xlane.xlu0 %935 }
 0x2dd   : > { %1686 = vpow2.f32 %v1019_v27  ;;  %v2412_v61 = vsub.f32 %v2283_v36, %v936_v56  ;;  %v938_v62 = vpop.xlane.xlu1 %937 }
 0x2de   : > { %v1679_v33 = vpop.eup %1678  ;;  %v2415_v0 = vsub.f32 %v2287_v39, %v938_v62  ;;  %1688 = vpow2.f32 %v1021_v30 }
 0x2df   : > { %v1031_v34 = vmul.f32 1.442695, %v2412_v61  ;;  %1081 = vadd.xlane.f32.xlu1 %v1679_v33  ;;  %1075 = vadd.xlane.f32.xlu0 %v1677_v59  ;;  %v1681_v36 = vpop.eup %1680 }
 0x2e0   : > { %v1033_v3 = vmul.f32 1.442695, %v2415_v0  ;;  %v932_v5 = vpop.xlane.xlu0 %931 }
 0x2e1   : > { %1690 = vpow2.f32 %v1031_v34  ;;  %v2420_v6 = vsub.f32 %v2292_v41, %v932_v5  ;;  %v934_v8 = vpop.xlane.xlu1 %933 }
 0x2e2   : > { %v2423_v11 = vsub.f32 %v2295_v42, %v934_v8  ;;  %1692 = vpow2.f32 %v1033_v3 }
 0x2e3   : > { %v1683_v12 = vpop.eup %1682  ;;  %v1027_v39 = vmul.f32 1.442695, %v2420_v6  ;;  %1077 = vadd.xlane.f32.xlu1 %v1681_v36 }
 0x2e4   : > { %v1029_v14 = vmul.f32 1.442695, %v2423_v11  ;;  %1087 = vadd.xlane.f32.xlu0 %v1683_v12  ;;  %v944_v15 = vpop.xlane.xlu0 %943  ;;  %v1685_v23 = vpop.eup %1684 }
 0x2e5   : > { %1694 = vpow2.f32 %v1027_v39  ;;  %v2428_v21 = vsub.f32 %v2299_v44, %v944_v15  ;;  %v946_v41 = vpop.xlane.xlu1 %945 }
 0x2e6   : > { %v2431_v28 = vsub.f32 %v2303_v47, %v946_v41  ;;  %1696 = vpow2.f32 %v1029_v14 }
 0x2e7   : > { %v1687_v42 = vpop.eup %1686  ;;  %v1039_v29 = vmul.f32 1.442695, %v2428_v21  ;;  %1089 = vadd.xlane.f32.xlu1 %v1685_v23 }
 0x2e8   : > { %v1041_v31 = vmul.f32 1.442695, %v2431_v28  ;;  %1083 = vadd.xlane.f32.xlu0 %v1687_v42  ;;  %v940_v35 = vpop.xlane.xlu0 %939  ;;  %v1689_v22 = vpop.eup %1688 }
 0x2e9   : > { %1698 = vpow2.f32 %v1039_v29  ;;  %v2436_v20 = vsub.f32 %v2308_v49, %v940_v35  ;;  %v942_v44 = vpop.xlane.xlu1 %941 }
 0x2ea   : > { %v2439_v38 = vsub.f32 %v2311_v50, %v942_v44  ;;  %1700 = vpow2.f32 %v1041_v31 }
 0x2eb   : > { %v1691_v47 = vpop.eup %1690  ;;  %v1035_v43 = vmul.f32 1.442695, %v2436_v20  ;;  %1085 = vadd.xlane.f32.xlu1 %v1689_v22 }
 0x2ec   : > { %v1037_v24 = vmul.f32 1.442695, %v2439_v38  ;;  %1095 = vadd.xlane.f32.xlu0 %v1691_v47  ;;  %v952_v25 = vpop.xlane.xlu0 %951  ;;  %v1693_v51 = vpop.eup %1692 }
 0x2ed   : > { %1702 = vpow2.f32 %v1035_v43  ;;  %v2444_v46 = vsub.f32 %v2315_v52, %v952_v25  ;;  %v954_v49 = vpop.xlane.xlu1 %953 }
 0x2ee   : > { %v2447_v53 = vsub.f32 %v2319_v55, %v954_v49  ;;  %1704 = vpow2.f32 %v1037_v24 }
 0x2ef   : > { %v1695_v50 = vpop.eup %1694  ;;  %v1047_v27 = vmul.f32 1.442695, %v2444_v46  ;;  %1097 = vadd.xlane.f32.xlu1 %v1693_v51 }
 0x2f0   : > { %v1049_v30 = vmul.f32 1.442695, %v2447_v53  ;;  %1091 = vadd.xlane.f32.xlu0 %v1695_v50  ;;  %v948_v56 = vpop.xlane.xlu0 %947  ;;  %v1697_v62 = vpop.eup %1696 }
 0x2f1   : > { %1706 = vpow2.f32 %v1047_v27  ;;  %v2452_v59 = vsub.f32 %v2324_v57, %v948_v56  ;;  %v950_v52 = vpop.xlane.xlu1 %949 }
 0x2f2   : > { %v2455_v33 = vsub.f32 %v2327_v58, %v950_v52  ;;  %1708 = vpow2.f32 %v1049_v30 }
 0x2f3   : > { %v1699_v55 = vpop.eup %1698  ;;  %v1043_v34 = vmul.f32 1.442695, %v2452_v59  ;;  %1093 = vadd.xlane.f32.xlu1 %v1697_v62 }
 0x2f4   : > { %v1045_v3 = vmul.f32 1.442695, %v2455_v33  ;;  %1103 = vadd.xlane.f32.xlu0 %v1699_v55  ;;  %v960_v5 = vpop.xlane.xlu0 %959  ;;  %v1701_v36 = vpop.eup %1700 }
 0x2f5   : > { %1710 = vpow2.f32 %v1043_v34  ;;  %v2460_v8 = vsub.f32 %v2331_v60, %v960_v5  ;;  %v962_v57 = vpop.xlane.xlu1 %961 }
 0x2f6   : > { %v2463_v12 = vsub.f32 %v2335_v63, %v962_v57  ;;  %1712 = vpow2.f32 %v1045_v3 }
 0x2f7   : > { %v1703_v58 = vpop.eup %1702  ;;  %v1055_v39 = vmul.f32 1.442695, %v2460_v8  ;;  %1105 = vadd.xlane.f32.xlu1 %v1701_v36 }
 0x2f8   : > { %v1057_v14 = vmul.f32 1.442695, %v2463_v12  ;;  %1099 = vadd.xlane.f32.xlu0 %v1703_v58  ;;  %v956_v15 = vpop.xlane.xlu0 %955  ;;  %v1705_v23 = vpop.eup %1704 }
 0x2f9   : > { %1714 = vpow2.f32 %v1055_v39  ;;  %v2468_v41 = vsub.f32 %v2340_v1, %v956_v15  ;;  %v958_v60 = vpop.xlane.xlu1 %957 }
 0x2fa   : > { %v2471_v42 = vsub.f32 %v2343_v2, %v958_v60  ;;  %1716 = vpow2.f32 %v1057_v14 }
 0x2fb   : > { %v1707_v63 = vpop.eup %1706  ;;  %v1051_v29 = vmul.f32 1.442695, %v2468_v41  ;;  %1101 = vadd.xlane.f32.xlu1 %v1705_v23 }
 0x2fc   : > { %v1053_v31 = vmul.f32 1.442695, %v2471_v42  ;;  %1111 = vadd.xlane.f32.xlu0 %v1707_v63  ;;  %v968_v35 = vpop.xlane.xlu0 %967  ;;  %v1709_v22 = vpop.eup %1708 }
 0x2fd   : > { %1718 = vpow2.f32 %v1051_v29  ;;  %v2476_v44 = vsub.f32 %v2347_v4, %v968_v35  ;;  %v970_v1 = vpop.xlane.xlu1 %969 }
 0x2fe   : > { %v2479_v47 = vsub.f32 %v2351_v7, %v970_v1  ;;  %1720 = vpow2.f32 %v1053_v31 }
 0x2ff   : > { %v1711_v2 = vpop.eup %1710  ;;  %v1063_v43 = vmul.f32 1.442695, %v2476_v44  ;;  %1113 = vadd.xlane.f32.xlu1 %v1709_v22 }
 0x300   : > { %v1065_v24 = vmul.f32 1.442695, %v2479_v47  ;;  %1107 = vadd.xlane.f32.xlu0 %v1711_v2  ;;  %v964_v25 = vpop.xlane.xlu0 %963  ;;  %v1713_v51 = vpop.eup %1712 }
 0x301   : > { %1722 = vpow2.f32 %v1063_v43  ;;  %v2484_v49 = vsub.f32 %v2356_v9, %v964_v25  ;;  %v966_v4 = vpop.xlane.xlu1 %965 }
 0x302   : > { %v2487_v50 = vsub.f32 %v2359_v10, %v966_v4  ;;  %1724 = vpow2.f32 %v1065_v24 }
 0x303   : > { %v1715_v7 = vpop.eup %1714  ;;  %v1059_v27 = vmul.f32 1.442695, %v2484_v49  ;;  %1109 = vadd.xlane.f32.xlu1 %v1713_v51 }
 0x304   : > { %v1061_v30 = vmul.f32 1.442695, %v2487_v50  ;;  %1119 = vadd.xlane.f32.xlu0 %v1715_v7  ;;  %v972_v56 = vpop.xlane.xlu0 %971  ;;  %v1717_v9 = vpop.eup %1716 }
 0x305   : > { %1726 = vpow2.f32 %v1059_v27  ;;  %v2492_v52 = vsub.f32 %v2364_v13, %v972_v56 }
 0x306   : > { %v974_v62 = vpop.xlane.xlu1 %973  ;;  %1728 = vpow2.f32 %v1061_v30 }
 0x307   : > { %v1719_v55 = vpop.eup %1718  ;;  %v1067_v34 = vmul.f32 1.442695, %v2492_v52  ;;  %v2496_v10 = vsub.f32 %v2367_v16, %v974_v62  ;;  %1121 = vadd.xlane.f32.xlu1 %v1717_v9 }
 0x308   : > { %1115 = vadd.xlane.f32.xlu0 %v1719_v55  ;;  %v976_v3 = vpop.xlane.xlu0 %975  ;;  %v1721_v13 = vpop.eup %1720 }
 0x309   : > { %1730 = vpow2.f32 %v1067_v34  ;;  %v1069_v5 = vmul.f32 1.442695, %v2496_v10  ;;  %v2500_v57 = vsub.f32 %v2371_v17, %v976_v3 }
 0x30a   : > { %v978_v36 = vpop.xlane.xlu1 %977 }
 0x30b   : > { %v1723_v58 = vpop.eup %1722  ;;  %1732 = vpow2.f32 %v1069_v5  ;;  %v1071_v39 = vmul.f32 1.442695, %v2500_v57  ;;  %v2504_v14 = vsub.f32 %v2375_v19, %v978_v36  ;;  %1117 = vadd.xlane.f32.xlu1 %v1721_v13 }
 0x30c   : > { %1127 = vadd.xlane.f32.xlu0 %v1723_v58  ;;  %v1725_v15 = vpop.eup %1724 }
 0x30d   : > { %1734 = vpow2.f32 %v1071_v39  ;;  %v1073_v16 = vmul.f32 1.442695, %v2504_v14 }
 0x30f   : > { %v1727_v60 = vpop.eup %1726  ;;  %1736 = vpow2.f32 %v1073_v16  ;;  %1129 = vadd.xlane.f32.xlu1 %v1725_v15 }
 0x310   : > { %1123 = vadd.xlane.f32.xlu0 %v1727_v60  ;;  %v1729_v17 = vpop.eup %1728 }
 0x313   : > { %v1731_v23 = vpop.eup %1730  ;;  %1125 = vadd.xlane.f32.xlu1 %v1729_v17 }
 0x314   : > { %1131 = vadd.xlane.f32.xlu0 %v1731_v23 }
 0x315   : > { %v1733_v63 = vpop.eup %1732 }
 0x317   : > { %v1735_v29 = vpop.eup %1734  ;;  %1133 = vadd.xlane.f32.xlu1 %v1733_v63 }
 0x318   : > { %1135 = vadd.xlane.f32.xlu0 %v1735_v29 }
 0x319   : > { %v1737_v19 = vpop.eup %1736 }
 0x31b   : > { %1137 = vadd.xlane.f32.xlu1 %v1737_v19 }
 0x368   : > { %v1080_v31 = vpop.xlane.xlu0 %1079 }
 0x369   : > { %1738 = vlog2.f32 %v1080_v31 }
 0x36c   : > { %v1082_v35 = vpop.xlane.xlu1 %1081  ;;  %v1076_v1 = vpop.xlane.xlu0 %1075 }
 0x36d   : > { %1740 = vlog2.f32 %v1082_v35 }
 0x36e   : > { %1742 = vlog2.f32 %v1076_v1 }
 0x370   : > { %v1078_v22 = vpop.xlane.xlu1 %1077 }
 0x371   : > { %1744 = vlog2.f32 %v1078_v22  ;;  %v1088_v2 = vpop.xlane.xlu0 %1087 }
 0x372   : > { %1746 = vlog2.f32 %v1088_v2 }
 0x373   : > { %v1739_v43 = vpop.eup %1738 }
 0x374   : > { %v1144_v24 = vmul.f32 0.6931472, %v1739_v43  ;;  %v1090_v25 = vpop.xlane.xlu1 %1089 }
 0x375   : > { %1748 = vlog2.f32 %v1090_v25  ;;  %v1084_v4 = vpop.xlane.xlu0 %1083 }
 0x376   : > { %v1205_v51 = vsub.f32 %v2380_v32, %v1144_v24  ;;  %1750 = vlog2.f32 %v1084_v4 }
 0x377   : > { %v1741_v7 = vpop.eup %1740 }
 0x378   : > { %v1743_v27 = vpop.eup %1742  ;;  %1237 = vst [vmem:[%s2509_s28 + $0x10] sm:$0xff] %v1205_v51  ;;  %v1146_v30 = vmul.f32 0.6931472, %v1741_v7  ;;  %v1086_v56 = vpop.xlane.xlu1 %1085 }
 0x379   : > { %v1140_v9 = vmul.f32 0.6931472, %v1743_v27  ;;  %1752 = vlog2.f32 %v1086_v56  ;;  %v1096_v62 = vpop.xlane.xlu0 %1095 }
 0x37a   : > { %v1206_v55 = vsub.f32 %v2388_v18, %v1146_v30  ;;  %1754 = vlog2.f32 %v1096_v62 }
 0x37b   : > { %v1745_v34 = vpop.eup %1744  ;;  %v1203_v32 = vsub.f32 %v2383_v26, %v1140_v9 }
 0x37c   : > { %v1747_v3 = vpop.eup %1746  ;;  %1238 = vst [vmem:[%s2509_s28 + $0x18] sm:$0xff] %v1206_v55  ;;  %v1142_v5 = vmul.f32 0.6931472, %v1745_v34  ;;  %v1098_v13 = vpop.xlane.xlu1 %1097 }
 0x37d   : > { %1235 = vst [vmem:[%s2509_s28] sm:$0xff] %v1203_v32  ;;  %v1152_v36 = vmul.f32 0.6931472, %v1747_v3  ;;  %1756 = vlog2.f32 %v1098_v13  ;;  %v1092_v58 = vpop.xlane.xlu0 %1091 }
 0x37e   : > { %v1204_v39 = vsub.f32 %v2391_v37, %v1142_v5  ;;  %1758 = vlog2.f32 %v1092_v58 }
 0x37f   : > { %v1749_v16 = vpop.eup %1748  ;;  %v1209_v18 = vsub.f32 %v2396_v40, %v1152_v36 }
 0x380   : > { %v1751_v15 = vpop.eup %1750  ;;  %1236 = vst [vmem:[%s2509_s28 + $0x8] sm:$0xff] %v1204_v39  ;;  %v1154_v26 = vmul.f32 0.6931472, %v1749_v16  ;;  %v1094_v60 = vpop.xlane.xlu1 %1093 }
 0x381   : > { %1241 = vst [vmem:[%s2509_s28 + $0x30] sm:$0xff] %v1209_v18  ;;  %v1148_v17 = vmul.f32 0.6931472, %v1751_v15  ;;  %1760 = vlog2.f32 %v1094_v60  ;;  %v1104_v23 = vpop.xlane.xlu0 %1103 }
 0x382   : > { %v1210_v63 = vsub.f32 %v2399_v45, %v1154_v26  ;;  %1762 = vlog2.f32 %v1104_v23 }
 0x383   : > { %v1753_v29 = vpop.eup %1752  ;;  %v1207_v37 = vsub.f32 %v2404_v48, %v1148_v17 }
 0x384   : > { %v1755_v19 = vpop.eup %1754  ;;  %1242 = vst [vmem:[%s2509_s28 + $0x38] sm:$0xff] %v1210_v63  ;;  %v1150_v40 = vmul.f32 0.6931472, %v1753_v29  ;;  %v1106_v31 = vpop.xlane.xlu1 %1105 }
 0x385   : > { %1239 = vst [vmem:[%s2509_s28 + $0x20] sm:$0xff] %v1207_v37  ;;  %v1160_v35 = vmul.f32 0.6931472, %v1755_v19  ;;  %1764 = vlog2.f32 %v1106_v31  ;;  %v1100_v1 = vpop.xlane.xlu0 %1099 }
 0x386   : > { %v1208_v22 = vsub.f32 %v2407_v54, %v1150_v40  ;;  %1766 = vlog2.f32 %v1100_v1 }
 0x387   : > { %v1757_v2 = vpop.eup %1756  ;;  %v1213_v45 = vsub.f32 %v2412_v61, %v1160_v35 }
 0x388   : > { %v1759_v43 = vpop.eup %1758  ;;  %1240 = vst [vmem:[%s2509_s28 + $0x28] sm:$0xff] %v1208_v22  ;;  %v1162_v48 = vmul.f32 0.6931472, %v1757_v2  ;;  %v1102_v24 = vpop.xlane.xlu1 %1101 }
 0x389   : > { %1245 = vst [vmem:[%s2509_s28 + $0x50] sm:$0xff] %v1213_v45  ;;  %v1156_v25 = vmul.f32 0.6931472, %v1759_v43  ;;  %1768 = vlog2.f32 %v1102_v24  ;;  %v1112_v4 = vpop.xlane.xlu0 %1111 }
 0x38a   : > { %v1214_v51 = vsub.f32 %v2415_v0, %v1162_v48  ;;  %1770 = vlog2.f32 %v1112_v4 }
 0x38b   : > { %v1761_v7 = vpop.eup %1760  ;;  %v1211_v54 = vsub.f32 %v2420_v6, %v1156_v25 }
 0x38c   : > { %v1763_v27 = vpop.eup %1762  ;;  %1246 = vst [vmem:[%s2509_s28 + $0x58] sm:$0xff] %v1214_v51  ;;  %v1158_v61 = vmul.f32 0.6931472, %v1761_v7  ;;  %v1114_v30 = vpop.xlane.xlu1 %1113 }
 0x38d   : > { %1243 = vst [vmem:[%s2509_s28 + $0x40] sm:$0xff] %v1211_v54  ;;  %v1168_v56 = vmul.f32 0.6931472, %v1763_v27  ;;  %1772 = vlog2.f32 %v1114_v30  ;;  %v1108_v9 = vpop.xlane.xlu0 %1107 }
 0x38e   : > { %v1212_v62 = vsub.f32 %v2423_v11, %v1158_v61  ;;  %1774 = vlog2.f32 %v1108_v9 }
 0x38f   : > { %v1765_v55 = vpop.eup %1764  ;;  %v1217_v0 = vsub.f32 %v2428_v21, %v1168_v56 }
 0x390   : > { %v1767_v34 = vpop.eup %1766  ;;  %1244 = vst [vmem:[%s2509_s28 + $0x48] sm:$0xff] %v1212_v62  ;;  %v1170_v6 = vmul.f32 0.6931472, %v1765_v55  ;;  %v1110_v32 = vpop.xlane.xlu1 %1109 }
 0x391   : > { %1249 = vst [vmem:[%s2509_s28 + $0x70] sm:$0xff] %v1217_v0  ;;  %v1164_v3 = vmul.f32 0.6931472, %v1767_v34  ;;  %1776 = vlog2.f32 %v1110_v32  ;;  %v1120_v5 = vpop.xlane.xlu0 %1119 }
 0x392   : > { %v1218_v13 = vsub.f32 %v2431_v28, %v1170_v6  ;;  %1778 = vlog2.f32 %v1120_v5 }
 0x393   : > { %v1769_v36 = vpop.eup %1768  ;;  %v1215_v11 = vsub.f32 %v2436_v20, %v1164_v3 }
 0x394   : > { %v1771_v58 = vpop.eup %1770  ;;  %1250 = vst [vmem:[%s2509_s28 + $0x78] sm:$0xff] %v1218_v13  ;;  %v1166_v21 = vmul.f32 0.6931472, %v1769_v36  ;;  %v1122_v39 = vpop.xlane.xlu1 %1121 }
 0x395   : > { %1247 = vst [vmem:[%s2509_s28 + $0x60] sm:$0xff] %v1215_v11  ;;  %v1176_v16 = vmul.f32 0.6931472, %v1771_v58  ;;  %1780 = vlog2.f32 %v1122_v39  ;;  %v1116_v18 = vpop.xlane.xlu0 %1115 }
 0x396   : > { %v1216_v15 = vsub.f32 %v2439_v38, %v1166_v21  ;;  %1782 = vlog2.f32 %v1116_v18 }
 0x397   : > { %v1773_v26 = vpop.eup %1772  ;;  %v1221_v28 = vsub.f32 %v2444_v46, %v1176_v16 }
 0x398   : > { %v1775_v60 = vpop.eup %1774  ;;  %1248 = vst [vmem:[%s2509_s28 + $0x68] sm:$0xff] %v1216_v15  ;;  %v1178_v20 = vmul.f32 0.6931472, %v1773_v26  ;;  %v1118_v17 = vpop.xlane.xlu1 %1117 }
 0x399   : > { %1253 = vst [vmem:[%s2509_s28 + $0x90] sm:$0xff] %v1221_v28  ;;  %v1172_v23 = vmul.f32 0.6931472, %v1775_v60  ;;  %1784 = vlog2.f32 %v1118_v17  ;;  %v1128_v63 = vpop.xlane.xlu0 %1127 }
 0x39a   : > { %v1222_v29 = vsub.f32 %v2447_v53, %v1178_v20  ;;  %1786 = vlog2.f32 %v1128_v63 }
 0x39b   : > { %v1777_v37 = vpop.eup %1776  ;;  %v1219_v38 = vsub.f32 %v2452_v59, %v1172_v23 }
 0x39c   : > { %v1779_v19 = vpop.eup %1778  ;;  %1254 = vst [vmem:[%s2509_s28 + $0x98] sm:$0xff] %v1222_v29  ;;  %v1174_v46 = vmul.f32 0.6931472, %v1777_v37  ;;  %v1130_v40 = vpop.xlane.xlu1 %1129 }
 0x39d   : > { %1251 = vst [vmem:[%s2509_s28 + $0x80] sm:$0xff] %v1219_v38  ;;  %v1184_v31 = vmul.f32 0.6931472, %v1779_v19  ;;  %1788 = vlog2.f32 %v1130_v40  ;;  %v1124_v35 = vpop.xlane.xlu0 %1123 }
 0x39e   : > { %v1220_v1 = vsub.f32 %v2455_v33, %v1174_v46  ;;  %1790 = vlog2.f32 %v1124_v35 }
 0x39f   : > { %v1781_v22 = vpop.eup %1780  ;;  %v1225_v53 = vsub.f32 %v2460_v8, %v1184_v31 }
 0x3a0   : > { %v1783_v2 = vpop.eup %1782  ;;  %1252 = vst [vmem:[%s2509_s28 + $0x88] sm:$0xff] %v1220_v1  ;;  %v1186_v59 = vmul.f32 0.6931472, %v1781_v22  ;;  %v1126_v45 = vpop.xlane.xlu1 %1125 }
 0x3a1   : > { %1257 = vst [vmem:[%s2509_s28 + $0xb0] sm:$0xff] %v1225_v53  ;;  %v1180_v43 = vmul.f32 0.6931472, %v1783_v2  ;;  %1792 = vlog2.f32 %v1126_v45  ;;  %v1132_v48 = vpop.xlane.xlu0 %1131 }
 0x3a2   : > { %v1226_v24 = vsub.f32 %v2463_v12, %v1186_v59  ;;  %1794 = vlog2.f32 %v1132_v48 }
 0x3a3   : > { %v1785_v25 = vpop.eup %1784  ;;  %v1223_v33 = vsub.f32 %v2468_v41, %v1180_v43 }
 0x3a4   : > { %v1787_v4 = vpop.eup %1786  ;;  %1258 = vst [vmem:[%s2509_s28 + $0xb8] sm:$0xff] %v1226_v24  ;;  %v1182_v8 = vmul.f32 0.6931472, %v1785_v25  ;;  %v1134_v51 = vpop.xlane.xlu1 %1133 }
 0x3a5   : > { %1255 = vst [vmem:[%s2509_s28 + $0xa0] sm:$0xff] %v1223_v33  ;;  %v1192_v7 = vmul.f32 0.6931472, %v1787_v4  ;;  %1796 = vlog2.f32 %v1134_v51  ;;  %v1136_v54 = vpop.xlane.xlu0 %1135 }
 0x3a6   : > { %v1224_v27 = vsub.f32 %v2471_v42, %v1182_v8  ;;  %1798 = vlog2.f32 %v1136_v54 }
 0x3a7   : > { %v1789_v12 = vpop.eup %1788  ;;  %v1229_v61 = vsub.f32 %v2476_v44, %v1192_v7 }
 0x3a8   : > { %v1791_v30 = vpop.eup %1790  ;;  %1256 = vst [vmem:[%s2509_s28 + $0xa8] sm:$0xff] %v1224_v27  ;;  %v1194_v41 = vmul.f32 0.6931472, %v1789_v12  ;;  %v1138_v56 = vpop.xlane.xlu1 %1137 }
 0x3a9   : > { %1261 = vst [vmem:[%s2509_s28 + $0xd0] sm:$0xff] %v1229_v61  ;;  %v1188_v9 = vmul.f32 0.6931472, %v1791_v30  ;;  %1800 = vlog2.f32 %v1138_v56 }
 0x3aa   : > { %v1230_v62 = vsub.f32 %v2479_v47, %v1194_v41 }
 0x3ab   : > { %v1793_v55 = vpop.eup %1792  ;;  %v1227_v42 = vsub.f32 %v2484_v49, %v1188_v9 }
 0x3ac   : > { %v1795_v0 = vpop.eup %1794  ;;  %1262 = vst [vmem:[%s2509_s28 + $0xd8] sm:$0xff] %v1230_v62  ;;  %v1190_v34 = vmul.f32 0.6931472, %v1793_v55 }
 0x3ad   : > { %1259 = vst [vmem:[%s2509_s28 + $0xc0] sm:$0xff] %v1227_v42  ;;  %v1196_v44 = vmul.f32 0.6931472, %v1795_v0 }
 0x3ae   : > { %v1228_v6 = vsub.f32 %v2487_v50, %v1190_v34 }
 0x3af   : > { %v1797_v32 = vpop.eup %1796  ;;  %v1231_v3 = vsub.f32 %v2492_v52, %v1196_v44 }
 0x3b0   : > { %v1799_v5 = vpop.eup %1798  ;;  %1260 = vst [vmem:[%s2509_s28 + $0xc8] sm:$0xff] %v1228_v6  ;;  %v1198_v47 = vmul.f32 0.6931472, %v1797_v32 }
 0x3b1   : > { %1263 = vst [vmem:[%s2509_s28 + $0xe0] sm:$0xff] %v1231_v3  ;;  %v1200_v49 = vmul.f32 0.6931472, %v1799_v5 }
 0x3b2   : > { %v1232_v13 = vsub.f32 %v2496_v10, %v1198_v47 }
 0x3b3   : > { %v1801_v36 = vpop.eup %1800  ;;  %v1233_v11 = vsub.f32 %v2500_v57, %v1200_v49 }
 0x3b4   : > { %1264 = vst [vmem:[%s2509_s28 + $0xe8] sm:$0xff] %v1232_v13  ;;  %v1202_v50 = vmul.f32 0.6931472, %v1801_v36 }
 0x3b5   : > { %1265 = vst [vmem:[%s2509_s28 + $0xf0] sm:$0xff] %v1233_v11 }
 0x3b6   : > { %v1234_v52 = vsub.f32 %v2504_v14, %v1202_v50 }
 0x3b8   : > { %1266 = vst [vmem:[%s2509_s28 + $0xf8] sm:$0xff] %v1234_v52 }
 0x3b9   : > { %1901 = shalt.err (!%p1898_p1)
}
 0x3ba   : > { %s1902_s24 = scalar_lea.hbm %s2577_s17, 4096  ;;  %s1906_s16 = scalar_lea.hbm %s2630_s5, 8192 }
 0x3bb   : > { %p1903_p13 = scmp.ne.s32.totalorder %s2577_s17, %s1902_s24  ;;  %p1907_p4 = scmp.lt.u32.totalorder %s2577_s17, %s2630_s5 }
 0x3bc   : > { %p1908_p5 = scmp.lt.u32.totalorder %s1906_s16, %s1902_s24  ;;  %p1910_p11 = scmp.lt.u32.totalorder %s1902_s24, %s2577_s17 }
 0x3bd   : > { %p1904_p6 = pnand %p1903_p13, %p2644_p0 }
 0x3be   : > { %p1909_p8 = por %p1908_p5, %p1907_p4 }
 0x3bf   : > { %p1905_p10 = pneg %p1904_p6 }
 0x3c0   : > { %p1911_p2 = por %p1910_p11, %p1909_p8 }
 0x3c2   : > { %p1912_p3 = pnand %p1911_p2, %p1905_p10 }
 0x3c4   : > { %1915 = shalt.err (!%p1912_p3)
}
 0x3c5   : > { %s1966_s12 = smov 128   ;;  %s1967_s30 = smov 8  }
 0x3c6   : > { %1581 = dma.vmem_to_hbm [thread:$0]  (%p2644_p0), %s2579_s13, 4096, %s2577_s17, %s1268_s22, %s1966_s12, %s1966_s12, %s1967_s30  }
 0x3c7 PF: > { %s1296_s11 = sand.u32 1, %s1946_s18   ;;  %p2645_p7 = scmp.ne.s32.totalorder %s2635_s25, 0 }
 0x3c8   : > { %p2646_p9 = scmp.ge.s32.totalorder %s1958_s21, 2  ;;  %s1297_s7 = scalar_lea.sflag [#allocation4], %s1296_s11 }
 0x3ca   : > { %p1595_p12 = pnand %p2646_p9, %p2645_p7 }
 0x3cc   : > { %1941 = dma.done.wait (!%p1595_p12), %s1297_s7, 4096  }
 0x3cd   : > { %1943 = vsyncadd (!%p1595_p12), %s1297_s7, 4294963200  ;;  %p19_p1 = scmp.ge.s32.totalorder %s2114_s29, 4   ;;  %s2647_s18 = smov %s1950_s19 }
 0x3ce   : > { %s2648_s19 = smov %s1954_s20  ;;  %s2649_s20 = smov %s2130_s27 }
 0x3cf   : > { %s2650_s21 = smov %s2114_s29  ;;  %21 = sbr.rel (!%p19_p1) target bundleno = 6 (0x6), region = 93 }
 0x3d6   :  { %1302 = vsyncpa [#allocation3], 1 }
 0x3d7   :  { %1304 = vsyncpa [#allocation3 + $0x1], 1 }
 0x3d8   :  { %1305 = vsyncpa [#allocation6], 1 }
 0x3d9   :  { %1306 = vsyncpa [#allocation4], 1 }
 0x3da   :  { %1308 = vsyncpa [#allocation4 + $0x1], 1 }

</bundles_post_ra>
